<compile_context>
chip_gen: v7x
topology: tpu7x:2x2x1
jax: 0.10.0
libtpu: 0.0.40
codegen_flags: <defaults>
</compile_context>

<pallas_src>
import jax
import jax.numpy as jnp
import numpy as np
from jax.experimental import pallas as pl
from jax.experimental.pallas import tpu as pltpu


# ----------------------------- Pallas kernel --------------------------------
def wtf_down_kernel(x_ref, wA_ref, bA_ref, wh_ref, bh_ref, o_ref):
    oc = o_ref.shape[1]                                     # out_ch
    x = x_ref[0]                                            # (4*in_ch, tm)

    # Fused matmul over the packed corner slab:
    #   rows [0:oc)  = outconv_bn_relu_L(yL)   (gate branch)
    #   rows [oc: )  = conv_bn_relu(cat(yHL,yLH,yHH))  (H branch)
    # (Haar combine folded into wA; f32 accumulation.)
    t = jnp.dot(wA_ref[...], x, preferred_element_type=jnp.float32) + bA_ref[...]
    gate = jax.nn.sigmoid(jnp.maximum(t[:oc], 0.0))         # sigmoid(relu(.))
    yH1 = jnp.maximum(t[oc:], 0.0)                          # (in_ch, tm), f32

    wh = wh_ref[...]
    yH2 = jnp.dot(wh, yH1.astype(wh.dtype),
                  preferred_element_type=jnp.float32) + bh_ref[...]
    yH2 = jnp.maximum(yH2, 0.0)                             # relu(outconv_H)

    o_ref[0] = (yH2 * gate).astype(o_ref.dtype)


# ----------------------------- Tile selection --------------------------------
def _pick_tile(Pb, B, C, in_ch, out_ch, in_bytes, out_bytes, tm_cap):
    LANE = 128
    if Pb <= LANE:
        return Pb                                   # full-extent lane block

    tm = max(LANE, (min(tm_cap, 32768) // LANE) * LANE)
    tm = min(tm, (Pb // LANE) * LANE)               # block never exceeds array

    # Honest VMEM footprint: double-buffered in/out blocks + f32 intermediates
    # (fused matmul result, gate, yH1, yH2).
    def footprint(t):
        blocks = 2 * t * 4 * C * in_bytes + 2 * t * out_ch * out_bytes
        inter = 4 * t * (2 * in_ch + 3 * out_ch)
        return blocks + inter

    budget = (32 << 20) - (8 << 20)                 # vmem_limit minus headroom
    while tm > LANE and footprint(tm) > budget:
        tm = max(LANE, ((tm // 2) // LANE) * LANE)

    # v7x has 2 TensorCores: prefer an even total grid-step count when cheap.
    ntiles = pl.cdiv(Pb, tm)
    if (B * ntiles) % 2 == 1:
        tm2 = max(LANE, pl.cdiv(pl.cdiv(Pb, ntiles + 1), LANE) * LANE)
        if tm2 <= (Pb // LANE) * LANE and (B * pl.cdiv(Pb, tm2)) % 2 == 0:
            tm = tm2
    return tm


# ------------------------------- Wrapper -------------------------------------
def wtf_down(x, params, out_ch, *, tm_cap=32768,
             input_dtype=jnp.float32, output_dtype=jnp.float32):
    """x: (B, in_ch, H, W) float32 NCHW.  Returns (B, out_ch, H//2, W//2)."""
    B, C, H, W = x.shape
    assert H % 2 == 0 and W % 2 == 0
    H2, W2 = H // 2, W // 2
    Pb = H2 * W2

    wA, bA, wh, bh = params
    in_ch = wh.shape[1]
    # Matmul weights follow the activation dtype (native single-pass MXU in
    # bf16); biases / accumulation / elementwise math stay f32.
    wA = wA.astype(input_dtype)
    wh = wh.astype(input_dtype)

    # Pack 2x2 corners channels-major per batch: (B, 4C, H2*W2), pixels on
    # lanes.  Row order of the 4C axis is [a | b | c | d] corner blocks --
    # must match fold_params().
    # TODO(synk): this is the one remaining full-tensor XLA layout pass;
    # eliminating it needs either a packed layout propagated through the
    # surrounding network or an in-kernel stride-2 lane de-interleave of raw
    # NCHW blocks (reviewer options (a)/(b)).
    xt = x.reshape(B, C, H2, 2, W2, 2)
    xt = jnp.transpose(xt, (0, 3, 5, 1, 2, 4))              # (B, 2, 2, C, H2, W2)
    xt = xt.reshape(B, 4 * C, Pb).astype(input_dtype)

    in_bytes = np.dtype(input_dtype).itemsize
    out_bytes = np.dtype(output_dtype).itemsize
    tm = _pick_tile(Pb, B, C, in_ch, out_ch, in_bytes, out_bytes, tm_cap)
    ntiles = pl.cdiv(Pb, tm)                                # partial last block OK

    full = lambda a: pl.BlockSpec(a.shape, lambda b, i: (0,) * a.ndim)

    out = pl.pallas_call(
        wtf_down_kernel,
        out_shape=jax.ShapeDtypeStruct((B, out_ch, Pb), output_dtype),
        grid_spec=pltpu.PrefetchScalarGridSpec(
            num_scalar_prefetch=0,
            grid=(B, ntiles),
            in_specs=[pl.BlockSpec((1, 4 * C, tm), lambda b, i: (b, 0, i)),
                      full(wA), full(bA), full(wh), full(bh)],
            out_specs=pl.BlockSpec((1, out_ch, tm), lambda b, i: (b, 0, i)),
        ),
        compiler_params=pltpu.CompilerParams(
            dimension_semantics=("parallel", "parallel"),
            vmem_limit_bytes=32 * 1024 * 1024,   # above v5e's 16 MiB default,
        ),                                       # well under v7x's 64 MiB/TC
    )(xt, wA, bA, wh, bh)

    # Lane axis is already (H2*W2) per batch -> free reshape, no transpose.
    return out.reshape(B, out_ch, H2, W2)


# --------------------------- Parameter setup ---------------------------------
def make_conv_bn_params(key, in_c, out_c):
    """PyTorch Conv2d(k=1) + BatchNorm2d (defaults, eval mode) folded into
    W (out_c, in_c) and bias (out_c,)."""
    k1, k2 = jax.random.split(key)
    bound = 1.0 / np.sqrt(in_c)
    w = jax.random.uniform(k1, (out_c, in_c), jnp.float32, -bound, bound)
    b = jax.random.uniform(k2, (out_c,), jnp.float32, -bound, bound)
    gamma = jnp.ones((out_c,), jnp.float32)
    beta = jnp.zeros((out_c,), jnp.float32)
    mean = jnp.zeros((out_c,), jnp.float32)
    var = jnp.ones((out_c,), jnp.float32)
    eps = 1e-5
    scale = gamma / jnp.sqrt(var + eps)
    return (w * scale[:, None]).astype(jnp.float32), \
           ((b - mean) * scale + beta).astype(jnp.float32)


def make_params(key, in_ch, out_ch):
    """Raw (unfolded) module parameters in conv (out, in) layout."""
    k1, k2, k3 = jax.random.split(key, 3)
    W1, b1 = make_conv_bn_params(k1, 3 * in_ch, in_ch)    # conv_bn_relu
    wL, bL = make_conv_bn_params(k2, in_ch, out_ch)       # outconv_bn_relu_L
    wH, bH = make_conv_bn_params(k3, in_ch, out_ch)       # outconv_bn_relu_H
    return (W1, b1), (wL, bL), (wH, bH)


def fold_params(raw):
    """Fold the Haar 2x2 combine into the 1x1-conv weights (channels-major)
    and fuse the two slab-consuming matmuls into one weight matrix.

    pytorch_wavelets haar / mode='zero' / J=1 gives (a,b,c,d = 2x2 corners):
        yL        = (a + b + c + d)/2
        y_HL      = (a + b - c - d)/2
        y_LH      = (a - b + c - d)/2
        y_HH      = (a - b - c + d)/2
    """
    (W1, b1), (wL, bL), (wH, bH) = raw
    in_ch = W1.shape[0]
    w_hl = W1[:, :in_ch]
    w_lh = W1[:, in_ch:2 * in_ch]
    w_hh = W1[:, 2 * in_ch:]
    w1f = 0.5 * jnp.concatenate(
        [ w_hl + w_lh + w_hh,      # coefficient of corner a = x[2i,   2j]
          w_hl - w_lh - w_hh,      # corner b = x[2i,   2j+1]
         -w_hl + w_lh - w_hh,      # corner c = x[2i+1, 2j]
         -w_hl - w_lh + w_hh],     # corner d = x[2i+1, 2j+1]
        axis=1)                                            # (in_ch, 4*in_ch)
    wlf = 0.5 * jnp.concatenate([wL, wL, wL, wL], axis=1)  # (out_ch, 4*in_ch)
    # Fused slab matmul: rows [L-branch (gate) | H-branch].
    wA = jnp.concatenate([wlf, w1f], axis=0)               # (out_ch+in_ch, 4*in_ch)
    bA = jnp.concatenate([bL, b1]).reshape(-1, 1)
    return wA, bA, wH, bH.reshape(-1, 1)


# -------------------------- Pure-JAX reference --------------------------------
def ref_forward(x, raw):
    (W1, b1), (wL, bL), (wH, bH) = raw
    a = x[:, :, 0::2, 0::2]; b = x[:, :, 0::2, 1::2]
    c = x[:, :, 1::2, 0::2]; d = x[:, :, 1::2, 1::2]
    yL   = (a + b + c + d) * 0.5
    y_hl = (a + b - c - d) * 0.5
    y_lh = (a - b + c - d) * 0.5
    y_hh = (a - b - c + d) * 0.5
    yH_cat = jnp.concatenate([y_hl, y_lh, y_hh], axis=1)

    def conv1x1_relu(t, Wm, bias):
        y = jnp.einsum('bchw,oc->bohw', t, Wm) + bias.reshape(1, -1, 1, 1)
        return jnp.maximum(y, 0.0)

    yH1 = conv1x1_relu(yH_cat, W1, b1)
    yL1 = conv1x1_relu(yL, wL, bL)
    yH2 = conv1x1_relu(yH1, wH, bH)
    return yH2 * jax.nn.sigmoid(yL1)


# --------------------------------- Main ---------------------------------------
if __name__ == "__main__":
    in_ch, out_ch = 4, 8

    key = jax.random.PRNGKey(0)
    kx, kp, kx2 = jax.random.split(key, 3)
    raw = make_params(kp, in_ch, out_ch)
    params = fold_params(raw)

    # --- Shape 1: small (B=2, 16x16): full-extent lane blocks (Pb = 64 < 128).
    x = jax.random.normal(kx, (2, in_ch, 16, 16), dtype=jnp.float32)
    ref = jax.block_until_ready(ref_forward(x, raw))

    out = jax.block_until_ready(wtf_down(x, params, out_ch))
    assert out.shape == (2, out_ch, 8, 8)
    np.testing.assert_allclose(np.asarray(out), np.asarray(ref),
                               rtol=1e-5, atol=1e-5)

    # bf16 activations + bf16 weights + bf16 output (loose tolerance).
    out_bf16 = jax.block_until_ready(
        wtf_down(x, params, out_ch,
                 input_dtype=jnp.bfloat16, output_dtype=jnp.bfloat16))
    np.testing.assert_allclose(np.asarray(out_bf16.astype(jnp.float32)),
                               np.asarray(ref), rtol=1e-1, atol=1e-1)

    # --- Shape 2: 36x36 -> Pb = 324: multi-step 2-D grid with a PARTIAL last
    # lane block (exercises the no-pad / no-slice path).
    x2 = jax.random.normal(kx2, (2, in_ch, 36, 36), dtype=jnp.float32)
    ref2 = jax.block_until_ready(ref_forward(x2, raw))
    out2 = jax.block_until_ready(wtf_down(x2, params, out_ch))
    assert out2.shape == (2, out_ch, 18, 18)
    np.testing.assert_allclose(np.asarray(out2), np.asarray(ref2),
                               rtol=1e-5, atol=1e-5)

    print("KERNEL_OK")
</pallas_src>

<mosaic_0001>
module attributes {stable_mosaic.version = 11 : i64} {
  func.func @wtf_down_kernel(%arg0: i32, %arg1: i32, %arg2: memref<1x16x64xf32, #tpu.memory_space<vmem>>, %arg3: memref<12x16xf32, #tpu.memory_space<vmem>>, %arg4: memref<12x1xf32, #tpu.memory_space<vmem>>, %arg5: memref<8x4xf32, #tpu.memory_space<vmem>>, %arg6: memref<8x1xf32, #tpu.memory_space<vmem>>, %arg7: memref<1x8x64xf32, #tpu.memory_space<vmem>>) attributes {dimension_semantics = [#tpu.dimension_semantics<parallel>, #tpu.dimension_semantics<parallel>], iteration_bounds = array<i64: 2, 1>, scalar_prefetch = 0 : i64, scratch_operands = 0 : i64, tpu.core_type = #tpu.core_type<tc>, window_params = [{transform_indices = @transform_0, window_bounds = array<i64: 1, 16, 64>}, {pipeline_mode = #tpu.pipeline_mode<synchronous>, transform_indices = @transform_1, window_bounds = array<i64: 12, 16>}, {pipeline_mode = #tpu.pipeline_mode<synchronous>, transform_indices = @transform_2, window_bounds = array<i64: 12, 1>}, {pipeline_mode = #tpu.pipeline_mode<synchronous>, transform_indices = @transform_3, window_bounds = array<i64: 8, 4>}, {pipeline_mode = #tpu.pipeline_mode<synchronous>, transform_indices = @transform_4, window_bounds = array<i64: 8, 1>}, {transform_indices = @transform_5, window_bounds = array<i64: 1, 8, 64>}]} {
    %c0 = arith.constant 0 : index
    %c0_0 = arith.constant 0 : index
    %c0_1 = arith.constant 0 : index
    %0 = vector.load %arg2[%c0, %c0_0, %c0_1] : memref<1x16x64xf32, #tpu.memory_space<vmem>>, vector<1x16x64xf32>
    %1 = vector.shape_cast %0 : vector<1x16x64xf32> to vector<16x64xf32>
    %c0_2 = arith.constant 0 : index
    %c0_3 = arith.constant 0 : index
    %2 = vector.load %arg3[%c0_2, %c0_3] : memref<12x16xf32, #tpu.memory_space<vmem>>, vector<12x16xf32>
    %cst = arith.constant dense<0.000000e+00> : vector<12x64xf32>
    %3 = tpu.matmul %2, %1, %cst {dimension_numbers = #tpu.dot_dimension_numbers<[1], [0], [0], [1], [0, 0, 1, 1], [], []>} : vector<12x16xf32>, vector<16x64xf32>, vector<12x64xf32> -> vector<12x64xf32>
    %c0_4 = arith.constant 0 : index
    %c0_5 = arith.constant 0 : index
    %4 = vector.load %arg4[%c0_4, %c0_5] : memref<12x1xf32, #tpu.memory_space<vmem>>, vector<12x1xf32>
    %5 = vector.broadcast %4 : vector<12x1xf32> to vector<12x64xf32>
    %6 = arith.addf %3, %5 : vector<12x64xf32>
    %7 = vector.extract_strided_slice %6 {offsets = [0, 0], sizes = [8, 64], strides = [1, 1]} : vector<12x64xf32> to vector<8x64xf32>
    %cst_6 = arith.constant 0.000000e+00 : f32
    %8 = vector.broadcast %cst_6 : f32 to vector<8x64xf32>
    %9 = arith.maximumf %7, %8 : vector<8x64xf32>
    %10 = arith.negf %9 : vector<8x64xf32>
    %11 = math.exp %10 : vector<8x64xf32>
    %cst_7 = arith.constant 1.000000e+00 : f32
    %12 = vector.broadcast %cst_7 : f32 to vector<8x64xf32>
    %13 = arith.addf %12, %11 : vector<8x64xf32>
    %14 = arith.divf %12, %13 : vector<8x64xf32>
    %15 = vector.extract_strided_slice %6 {offsets = [8, 0], sizes = [4, 64], strides = [1, 1]} : vector<12x64xf32> to vector<4x64xf32>
    %cst_8 = arith.constant 0.000000e+00 : f32
    %16 = vector.broadcast %cst_8 : f32 to vector<4x64xf32>
    %17 = arith.maximumf %15, %16 : vector<4x64xf32>
    %c0_9 = arith.constant 0 : index
    %c0_10 = arith.constant 0 : index
    %18 = vector.load %arg5[%c0_9, %c0_10] : memref<8x4xf32, #tpu.memory_space<vmem>>, vector<8x4xf32>
    %cst_11 = arith.constant dense<0.000000e+00> : vector<8x64xf32>
    %19 = tpu.matmul %18, %17, %cst_11 {dimension_numbers = #tpu.dot_dimension_numbers<[1], [0], [0], [1], [0, 0, 1, 1], [], []>} : vector<8x4xf32>, vector<4x64xf32>, vector<8x64xf32> -> vector<8x64xf32>
    %c0_12 = arith.constant 0 : index
    %c0_13 = arith.constant 0 : index
    %20 = vector.load %arg6[%c0_12, %c0_13] : memref<8x1xf32, #tpu.memory_space<vmem>>, vector<8x1xf32>
    %21 = vector.broadcast %20 : vector<8x1xf32> to vector<8x64xf32>
    %22 = arith.addf %19, %21 : vector<8x64xf32>
    %cst_14 = arith.constant 0.000000e+00 : f32
    %23 = vector.broadcast %cst_14 : f32 to vector<8x64xf32>
    %24 = arith.maximumf %22, %23 : vector<8x64xf32>
    %25 = arith.mulf %24, %14 : vector<8x64xf32>
    %c0_15 = arith.constant 0 : index
    %c0_16 = arith.constant 0 : index
    %c0_17 = arith.constant 0 : index
    %26 = vector.load %arg7[%c0_15, %c0_16, %c0_17] : memref<1x8x64xf32, #tpu.memory_space<vmem>>, vector<1x8x64xf32>
    %27 = vector.shape_cast %26 : vector<1x8x64xf32> to vector<8x64xf32>
    %28 = vector.shape_cast %25 : vector<8x64xf32> to vector<1x8x64xf32>
    tpu.vector_store %arg7[%c0_15, %c0_16, %c0_17], %28 {strides = array<i32>} : memref<1x8x64xf32, #tpu.memory_space<vmem>>, vector<1x8x64xf32>,
    return
  }
  func.func @transform_0(%arg0: i32, %arg1: i32) -> (i32, i32, i32) {
    %c0_i32 = arith.constant 0 : i32
    %c0_i32_0 = arith.constant 0 : i32
    return %arg0, %c0_i32, %arg1 : i32, i32, i32
  }
  func.func @transform_1(%arg0: i32, %arg1: i32) -> (i32, i32) {
    %c0_i32 = arith.constant 0 : i32
    %c0_i32_0 = arith.constant 0 : i32
    %c0_i32_1 = arith.constant 0 : i32
    return %c0_i32, %c0_i32_0 : i32, i32
  }
  func.func @transform_2(%arg0: i32, %arg1: i32) -> (i32, i32) {
    %c0_i32 = arith.constant 0 : i32
    %c0_i32_0 = arith.constant 0 : i32
    %c0_i32_1 = arith.constant 0 : i32
    return %c0_i32, %c0_i32_0 : i32, i32
  }
  func.func @transform_3(%arg0: i32, %arg1: i32) -> (i32, i32) {
    %c0_i32 = arith.constant 0 : i32
    %c0_i32_0 = arith.constant 0 : i32
    %c0_i32_1 = arith.constant 0 : i32
    return %c0_i32, %c0_i32_0 : i32, i32
  }
  func.func @transform_4(%arg0: i32, %arg1: i32) -> (i32, i32) {
    %c0_i32 = arith.constant 0 : i32
    %c0_i32_0 = arith.constant 0 : i32
    %c0_i32_1 = arith.constant 0 : i32
    return %c0_i32, %c0_i32_0 : i32, i32
  }
  func.func @transform_5(%arg0: i32, %arg1: i32) -> (i32, i32, i32) {
    %c0_i32 = arith.constant 0 : i32
    %c0_i32_0 = arith.constant 0 : i32
    return %arg0, %c0_i32, %arg1 : i32, i32, i32
  }
}

</mosaic_0001>

<bundles_post_ra>
// kernel: tpu_custom_call.1
= control target key start
LH: loop header
LB: loop body
LE: loop exit
PB: predicated region body
PF: predicated region fallthrough
CT: control target
= control target key end

     0   :  { %10 = vsyncpa [#allocation3], 0  ;;  %s989_s0 = inlined_call_operand.vmem [shape: f32[2,16,64], index: 0, kind: input, shape index: {}]   ;;  %s990_s1 = inlined_call_operand.hbm [shape: f32[12,16], index: 1, kind: input, shape index: {}]   ;;  %s991_s2 = inlined_call_operand.vmem [shape: f32[12,1], index: 2, kind: input, shape index: {}]   ;;  %s992_s3 = inlined_call_operand.vmem [shape: f32[8,4], index: 3, kind: input, shape index: {}]   ;;  %s993_s4 = inlined_call_operand.vmem [shape: f32[8,1], index: 4, kind: input, shape index: {}]   ;;  %s994_s5 = inlined_call_operand.hbm [shape: f32[2,8,64], index: 5, kind: output, shape index: {}]  }
   0x1   :  { %11 = vsyncpa [#allocation4], 0 }
   0x2   :  { %13 = vsyncpa [#allocation4 + $0x1], 0  ;;  %s827_s18 = smov 0   ;;  %s829_s19 = smov 0  }
   0x3   :  { %s831_s20 = smov 0   ;;  %s833_s21 = smov 0  }
   0x4   :  { %s835_s22 = smov 0   ;;  %s837_s23 = smov 0  }
   0x5 LB: > { %s559_s24 = sadd.s32 4294967295, %s788_s23   ;;  %s560_s25 = sadd.s32 4294967294, %s788_s23   ;;  %s788_s23 = sphi %s837_s23, %s19_s23   ;;  %s784_s22 = sphi %s835_s22, %s1012_s22   ;;  %s780_s21 = sphi %s833_s21, %s1011_s21   ;;  %s776_s20 = sphi %s831_s20, %s1010_s20   ;;  %s772_s19 = sphi %s829_s19, %s1009_s19   ;;  %s768_s18 = sphi %s827_s18, %s1008_s18  }
   0x6   : > { %s31_s26 = sadd.s32 1, %s784_s22  ;;  %s152_s27 = sadd.s32 1, %s776_s20 }
   0x7   : > { %p33_p0 = scmp.ge.s32.totalorder %s31_s26, 2  ;;  %p162_p1 = scmp.ne.s32.totalorder %s776_s20, %s772_s19 }
   0x8   : > { %p163_p2 = scmp.eq.s32.totalorder %s559_s24, 1  ;;  %p168_p3 = scmp.ne.s32.totalorder %s772_s19, %s768_s18 }
   0x9   : > { %s1014_s26 = smov (%p33_p0, %s31_s26), 0  ;;  %p169_p5 = scmp.eq.s32.totalorder %s560_s25, 1 }
   0xa   : > { %p867_p4 = por %p163_p2, %p162_p1  ;;  %s147_s29 = ssub.s32 %s784_s22, %s1014_s26 }
   0xb   : > { %p561_p6 = scmp.ge.s32.totalorder %s788_s23, 1  ;;  %p150_p7 = scmp.eq.s32.totalorder %s147_s29, 0 }
   0xc   : > { %s999_s28 = scalar_select %p867_p4, 1, 0 }
   0xd   : > { %p874_p8 = por %p169_p5, %p168_p3  ;;  %p176_p9 = scmp.lt.s32.totalorder %s788_s23, 3 }
   0xe   : > { %s880_s6 = scalar_select %p150_p7, %s776_s20, %s152_s27  }
   0xf   : > { %s1000_s30 = scalar_select %p874_p8, 1, 0 }
  0x10   : > { %p882_p10 = pnand %p561_p6, %p176_p9  ;;  %p886_p11 = scmp.eq.s32.totalorder %s559_s24, 0 }
  0x11   : > { %s790_s9 = smov [#allocation2]   ;;  %s678_s14 = scalar_lea.hbm %s990_s1, 256 }
  0x12   : > { %s1001_s7 = scalar_select %p882_p10, 1, 0 }
  0x13   : > { %s1002_s8 = scalar_select %p886_p11, 1, 0 }
  0x14   : > { %p607_p12 = pneg %p882_p10  ;;  %s188_s10 = sshll.u32 %s790_s9, 4  ;;  %s189_s10 = int_to_ptr.vmem [resolvable:$true] %s188_s10 }
  0x15   : > { %p679_p0 = scmp.ne.s32.totalorder %s990_s1, %s678_s14  ;;  %p685_p5 = scmp.lt.u32.totalorder %s678_s14, %s990_s1 }
  0x16   : > { %p894_p13 = pnand %p886_p11, %p607_p12 }
  0x18   : > { %p680_p1 = pneg %p894_p13 }
  0x1a   : > { %p681_p2 = pnand %p680_p1, %p679_p0 }
  0x1c   : > { %p682_p3 = pneg %p681_p2 }
  0x1e   : > { %p687_p6 = pnand %p685_p5, %p682_p3 }
  0x20   : > { %690 = shalt.err (!%p687_p6)
}
  0x21   : > { %s691_s25 = scalar_lea.vmem %s189_s10, 256  ;;  %p699_p8 = scmp.lt.s32.totalorder %s189_s10, %s189_s10 }
  0x22   : > { %p692_p7 = scmp.ne.s32.totalorder %s189_s10, %s691_s25  ;;  %p700_p4 = scmp.lt.s32.totalorder %s691_s25, %s691_s25 }
  0x24   : > { %p694_p9 = pnand %p692_p7, %p680_p1  ;;  %p701_p11 = por %p700_p4, %p699_p8 }
  0x26   : > { %p695_p12 = pneg %p694_p9 }
  0x28   : > { %p702_p10 = pnand %p701_p11, %p695_p12 }
  0x2a   : > { %705 = shalt.err (!%p702_p10)
}
  0x2b   : > { %s791_s27 = smov 128   ;;  %s792_s29 = smov 8  }
  0x2c   : > { %610 = dma.hbm_to_vmem [thread:$0]  (!%p894_p13), %s990_s1, 256, %s189_s10, [#allocation3], %s791_s27, %s791_s27, %s792_s29  }
  0x2d   : > { %p1004_p0 = scmp.ne.s32.totalorder %s1001_s7, 0 }
  0x2e   : > { %p1005_p2 = scmp.ne.s32.totalorder (!%p1004_p0), %s1002_s8, 0 }
  0x2f   : > { %224 = sbr.rel (%p1004_p0) target bundleno = 517 (0x205), region = 40 }
  0x36   : > { %759 = dma.done.wait (%p1005_p2), [#allocation3], 256  }
  0x37   : > { %761 = vsyncadd (%p1005_p2), [#allocation3], 4294967040  ;;  %p255_p4 = scmp.lt.s32.totalorder %s780_s21, 1  ;;  %v793_v0 = vmov 0   ;;  %vm279_vm0 = vcmask 130048   ;;  %v265_v3 = vld [vmem:[#allocation2] sm:$0xff] }
  0x38   : > { %672 = vset.pattern.permute.xlu0 %v793_v0  ;;  %673 = vset.pattern.permute.xlu1 %v793_v0  ;;  %v268_v5 = vld [vmem:[%s991_s2 + $0x8] sm:$0xf]  ;;  %v267_v6 = vld [vmem:[%s991_s2] sm:$0xff]  ;;  %v794_v8 = vmov 0.0   ;;  %vm795_vm1 = vmmov 0   ;;  %vm380_vm2 = vcmask 1043456  }
  0x39   : > { %s256_s11 = scalar_select %p255_p4, %s780_s21, 1  ;;  %589 = vmatprep.mubr.msk.f32.mxu0 %vm279_vm0, %v265_v3  ;;  %276 = vperm.xlu0 %672, %v268_v5   ;;  %v266_v7 = vld [vmem:[#allocation2 + $0x8] sm:$0xf]  ;;  %v370_v9 = vld [vmem:[%s993_s4] sm:$0xff]  ;;  %vm376_vm3 = vcmask 31744   ;;  %vm456_vm4 = vcmask 523264  }
  0x3a   : > { %592 = vmatprep.subr.mxu1 %v794_v8  ;;  %594 = vmatprep.mubr.msk.f32.mxu1 %vm795_vm1, %v794_v8  ;;  %v369_v15 = vld [vmem:[%s992_s3] sm:$0xff]  ;;  %s252_s9 = sand.u32 1, %s772_s19   ;;  %p1006_p10 = scmp.ne.s32.totalorder %s999_s28, 0 }
  0x3b   : > { %s578_s13 = sshll.u32 %s256_s11, 4  ;;  %373 = vperm.xlu1 %673, %v370_v9   ;;  %s566_s12 = sshll.u32 %s252_s9, 3 }
  0x3c   : > { %s262_s10 = scalar_lea.vmem %s989_s0, %s578_s13  ;;  %s575_s11 = sshll.u32 %s780_s21, 7 }
  0x3d   : > { %v263_v1 = vld [vmem:[%s262_s10] sm:$0xff]  ;;  %v264_v2 = vld [vmem:[%s262_s10 + $0x8] sm:$0xff]  ;;  %271 = vperm.xlu0 %672, %v267_v6   ;;  %s254_s13 = scalar_lea.vmem [#allocation5], %s566_s12  ;;  %s942_s7 = scalar_lea.hbm %s994_s5, %s575_s11 }
  0x3e   : > { %v597_v4 = vpack.c.bf16 %v264_v2, %v263_v1  ;;  %s473_s14 = sshll.u32 %s254_s13, 4  ;;  %s459_s8 = scalar_lea.sflag [#allocation4], %s252_s9  ;;  %s944_s14 = int_to_ptr.vmem [resolvable:$true] %s473_s14 }
  0x3f   : > { %s706_s16 = scalar_lea.vmem %s944_s14, 128  ;;  %s796_s21 = smov [#allocation5]  }
  0x40   : > { %598 = vmatprep.subr.bf16.mxu0 %v597_v4  ;;  %p707_p8 = scmp.ne.s32.totalorder %s944_s14, %s706_s16  ;;  %s710_s17 = sshll.u32 %s796_s21, 4  ;;  %s711_s17 = int_to_ptr.vmem [resolvable:$false] %s710_s17 }
  0x41   : > { %600 = vmatpush3.bf16.msra.mxu0 %v597_v4  ;;  %s712_s24 = scalar_lea.vmem %s711_s17, 256  ;;  %p713_p1 = scmp.lt.s32.totalorder %s944_s14, %s711_s17 }
  0x42   : > { %p708_p11 = pnand %p707_p8, %p1006_p10  ;;  %p714_p3 = scmp.lt.s32.totalorder %s712_s24, %s706_s16 }
  0x44   : > { %590 = vmatmul.mubr.msk.f32.vlgmr.msra.gmra.mrb[0].mxu0 %vm279_vm0, %v266_v7  ;;  %p709_p13 = pneg %p708_p11  ;;  %p715_p5 = por %p714_p3, %p713_p1 }
  0x46   : > { %p716_p6 = pnand %p715_p5, %p709_p13 }
  0xb8   : > { %v277_v10 = vpop.permute.xlu0 %276 }
  0xba   : > { %v374_v22 = vpop.permute.xlu1 %373 }
  0xbc   : > { %v272_v16 = vpop.permute.xlu0 %271 }
 0x117   : > { %v591_v11 = vpop.f32.mrb[0].mxu0 }
 0x118   : > { %v358_v12 = vadd.f32 %v591_v11, %v277_v10  ;;  %v352_v13 = vpop.f32.mrb[1].mxu0 }
 0x119   : > { %v353_v17 = vadd.f32 %v352_v13, %v272_v16 }
 0x11a   : > { %v368_v14 = vmax.f32 %v358_v12, 0.0 }
 0x11b   : > { %v361_v18 = vmax.f32 %v353_v17, 0.0 }
 0x11c   : > { %593 = vmatpush3.msk.msra.mxu1 %vm380_vm2, %v368_v14 }
 0x11d   : > { %595 = vmatmul.mubr.msk.f32.vlgmr.msra.gmra.mrb[0].mxu1 %vm376_vm3, %v369_v15  ;;  %v571_v19 = vmul.f32 -1.442695, %v361_v18 }
 0x11f   : > { %674 = vpow2.f32 %v571_v19 }
 0x129   : > { %v675_v20 = vpop.eup %674 }
 0x12a   : > { %v365_v21 = vadd.f32 1.0, %v675_v20 }
 0x12c   : > { %676 = vrcp.f32 %v365_v21 }
 0x136   : > { %v677_v27 = vpop.eup %676 }
 0x1f0   : > { %v450_v23 = vpop.f32.mrb[0].mxu1 }
 0x1f1   : > { %v451_v24 = vadd.f32 %v450_v23, %v374_v22  ;;  %v596_v25 = vpop.f32.mrb[1].mxu1 }
 0x1f3   : > { %v454_v26 = vmax.f32 %v451_v24, 0.0 }
 0x1f5   : > { %v455_v28 = vmul.f32 %v677_v27, %v454_v26 }
 0x1f7   : > { %457 = vst.msk [vmem:[%s254_s13] sm:$0xff] %vm456_vm4, %v455_v28 }
 0x1f8   : > { %719 = shalt.err (!%p716_p6)
}
 0x1f9   : > { %s720_s25 = scalar_lea.hbm %s942_s7, 128  ;;  %s724_s9 = scalar_lea.hbm %s994_s5, 256 }
 0x1fa   : > { %p721_p7 = scmp.ne.s32.totalorder %s942_s7, %s720_s25  ;;  %p725_p0 = scmp.lt.u32.totalorder %s942_s7, %s994_s5 }
 0x1fb   : > { %p726_p2 = scmp.lt.u32.totalorder %s724_s9, %s720_s25  ;;  %p728_p8 = scmp.lt.u32.totalorder %s720_s25, %s942_s7 }
 0x1fc   : > { %p722_p9 = pnand %p721_p7, %p1006_p10 }
 0x1fd   : > { %p727_p4 = por %p726_p2, %p725_p0 }
 0x1fe   : > { %p723_p12 = pneg %p722_p9 }
 0x1ff   : > { %p729_p11 = por %p728_p8, %p727_p4 }
 0x201   : > { %p730_p13 = pnand %p729_p11, %p723_p12 }
 0x203   : > { %733 = shalt.err (!%p730_p13)
}
 0x204   : > { %605 = dma.vmem_to_hbm [thread:$0]  (%p1006_p10), %s944_s14, 128, %s942_s7, %s459_s8  }
 0x205 PF: > { %p617_p1 = scmp.ge.s32.totalorder %s788_s23, 2  ;;  %s485_s13 = sand.u32 1, %s768_s18  }
 0x206   : > { %p1007_p3 = scmp.ne.s32.totalorder %s1000_s30, 0  ;;  %s486_s15 = scalar_lea.sflag [#allocation4], %s485_s13 }
 0x208   : > { %p612_p5 = pnand %p617_p1, %p1007_p3 }
 0x20a   : > { %763 = dma.done.wait (!%p612_p5), %s486_s15, 128  }
 0x20b   : > { %765 = vsyncadd (!%p612_p5), %s486_s15, 4294967168  ;;  %s19_s23 = sadd.s32 1, %s788_s23   ;;  %s1008_s18 = smov %s772_s19 }
 0x20c   : > { %p16_p6 = scmp.ge.s32.totalorder %s19_s23, 4   ;;  %s1009_s19 = smov %s776_s20 }
 0x20d   : > { %s1010_s20 = smov %s880_s6  ;;  %s1011_s21 = smov %s784_s22 }
 0x20e   : > { %s1012_s22 = smov %s1014_s26  ;;  %18 = sbr.rel (!%p16_p6) target bundleno = 5 (0x5), region = 80 }
 0x215   :  { %491 = vsyncpa [#allocation3], 1 }
 0x216   :  { %493 = vsyncpa [#allocation3 + $0x1], 1 }
 0x217   :  { %494 = vsyncpa [#allocation4], 1 }
 0x218   :  { %496 = vsyncpa [#allocation4 + $0x1], 1 }

</bundles_post_ra>
